<compile_context>
chip_gen: v7x
topology: tpu7x:2x2x1
jax: 0.10.0
libtpu: 0.0.40
codegen_flags: <defaults>
</compile_context>

<pallas_src>
import numpy as np
import jax
import jax.numpy as jnp
from jax.experimental import pallas as pl
from jax.experimental.pallas import tpu as pltpu

_BN_EPS = 1e-5


# ----------------------------------------------------------------------------
# Host-side parameter folding: eval-mode BN into the preceding 1x1 conv.
# ----------------------------------------------------------------------------
def fold_bn_into_conv(w, b, gamma, beta, mean, var, eps=_BN_EPS):
    """w: [C_in, C_out], b: [C_out]. Returns (w', b') s.t. bn(conv(x)) == x @ w' + b'."""
    scale = gamma / jnp.sqrt(var + eps)
    w_f = w * scale[None, :]
    b_f = (b - mean) * scale + beta
    return w_f, b_f


# ----------------------------------------------------------------------------
# Pallas kernel: fused MLP over one (batch, point-tile) block.
# Layout inside the kernel: channels on sublanes, points on lanes.
# ----------------------------------------------------------------------------
def _make_mlp_kernel(n_mats):
    """n_mats = number of (weight, bias) pairs = len(channels) - 1."""

    def kernel(*refs):
        # refs = (x_ref, wT0, b0, wT1, b1, ..., wT_{L-1}, b_{L-1}, out_ref)
        x_ref = refs[0]
        out_ref = refs[-1]
        wb = refs[1:-1]

        # x block: [1, C_in, tile_n] -> [C_in, tile_n]; bf16 operands for the MXU.
        h = x_ref[0].astype(jnp.bfloat16)
        for i in range(n_mats):
            wt = wb[2 * i][...]                           # [C_{i+1}, C_i]  (bf16)
            b = wb[2 * i + 1][...]                        # [C_{i+1}, 1]    (f32)
            # bf16 x bf16 -> f32 accumulate on the MXU; bias/ReLU in f32 (VPU).
            h = jnp.dot(wt, h, preferred_element_type=jnp.float32) + b
            if i < n_mats - 1:
                # hidden layer: BN folded into (wt, b); Dropout1d is eval no-op.
                h = jnp.maximum(h, 0.0).astype(jnp.bfloat16)
        out_ref[0] = h.astype(out_ref.dtype)              # [C_out, tile_n]

    return kernel


def full_connected_conv1d_forward(embeddings, params, *, tile_n=512):
    """embeddings: [B, C_in, N] (PyTorch layout). Returns [B, C_out, N] float32.
    params["weights_t"][i]: [C_{i+1}, C_i] bf16 (BN pre-folded on hidden layers),
    params["biases"][i]:    [C_{i+1}, 1]  f32."""
    B, c_in, N = embeddings.shape
    weights_t = params["weights_t"]
    biases = params["biases"]
    n_mats = len(weights_t)
    c_out = weights_t[-1].shape[0]

    # Point-tile: multiple of 128 lanes (lane-dense loads/stores), clamped to N.
    tile_n = min(tile_n, ((N + 127) // 128) * 128)
    tile_n = max(128, (tile_n // 128) * 128)
    n_pad = ((N + tile_n - 1) // tile_n) * tile_n
    x = embeddings
    if n_pad != N:
        x = jnp.pad(x, ((0, 0), (0, 0), (0, n_pad - N)))

    grid = (B, n_pad // tile_n)

    in_specs = [pl.BlockSpec((1, c_in, tile_n), lambda b, j: (b, 0, j))]
    args = [x]
    for wt, bias in zip(weights_t, biases):
        co, ci = wt.shape
        in_specs.append(pl.BlockSpec((co, ci), lambda b, j: (0, 0)))  # resident weight
        in_specs.append(pl.BlockSpec((co, 1), lambda b, j: (0, 0)))   # resident bias
        args.append(wt)
        args.append(bias)

    flops = int(2 * B * n_pad * sum(int(w.shape[0]) * int(w.shape[1]) for w in weights_t))
    bytes_accessed = int(
        x.size * x.dtype.itemsize
        + B * n_pad * c_out * 4
        + sum(w.size * 2 + b.size * 4 for w, b in zip(weights_t, biases))
    )

    out = pl.pallas_call(
        _make_mlp_kernel(n_mats),
        out_shape=jax.ShapeDtypeStruct((B, c_out, n_pad), jnp.float32),
        grid_spec=pltpu.PrefetchScalarGridSpec(
            num_scalar_prefetch=0,
            grid=grid,
            in_specs=in_specs,
            out_specs=pl.BlockSpec((1, c_out, tile_n), lambda b, j: (b, 0, j)),
        ),
        compiler_params=pltpu.CompilerParams(
            dimension_semantics=("parallel", "parallel")),
        cost_estimate=pl.CostEstimate(
            flops=flops, transcendentals=0, bytes_accessed=bytes_accessed),
    )(*args)
    return out[:, :, :N]


# Pure-JAX reference mirroring the kernel math (bf16 dot inputs, f32 accumulate).
def full_connected_conv1d_ref(embeddings, params):
    n = len(params["weights_t"])
    h = embeddings.astype(jnp.bfloat16)                       # [B, C_in, N]
    for i, (wt, b) in enumerate(zip(params["weights_t"], params["biases"])):
        h = jnp.einsum("oc,bcn->bon", wt, h,
                       preferred_element_type=jnp.float32) + b[None]
        if i < n - 1:
            h = jnp.maximum(h, 0.0).astype(jnp.bfloat16)
    return h                                                  # [B, C_out, N] f32


# ----------------------------------------------------------------------------
# main
# ----------------------------------------------------------------------------
if __name__ == "__main__":
    # channels = [in, hid1, hid2, out]; two hidden (conv+BN+ReLU+drop) layers + out conv.
    channels = [16, 64, 64, 128]      # out=128 keeps stores lane-dense
    B, N = 2, 2048                    # grid = (2, 4) -> 8 even steps of 512 points
    TILE_N = 512

    key = jax.random.PRNGKey(0)
    keys = jax.random.split(key, 1 + 6 * (len(channels) - 1))
    kx, kp = keys[0], keys[1:]

    embeddings = jax.random.normal(kx, (B, channels[0], N), dtype=jnp.float32)

    # Synthetic parameters: conv weights [C_in, C_out] with eval-mode BN running
    # stats / affine params on hidden layers, folded host-side in f32, then
    # transposed to [C_out, C_in] and cast to bf16 for the kernel.
    weights_t, biases = [], []
    n_mats = len(channels) - 1
    for i in range(n_mats):
        ci, co = channels[i], channels[i + 1]
        kw, kb, kg, kbe, km, kv = kp[6 * i: 6 * i + 6]
        w = 0.1 * jax.random.normal(kw, (ci, co), dtype=jnp.float32)
        b = 0.1 * jax.random.normal(kb, (co,), dtype=jnp.float32)
        if i < n_mats - 1:  # hidden layer: fold its BatchNorm1d (eval mode)
            gamma = 1.0 + 0.1 * jax.random.normal(kg, (co,), dtype=jnp.float32)
            beta = 0.1 * jax.random.normal(kbe, (co,), dtype=jnp.float32)
            mean = 0.1 * jax.random.normal(km, (co,), dtype=jnp.float32)
            var = 1.0 + 0.1 * jax.random.uniform(kv, (co,), dtype=jnp.float32)
            w, b = fold_bn_into_conv(w, b, gamma, beta, mean, var)
        weights_t.append(jnp.transpose(w).astype(jnp.bfloat16))   # [co, ci]
        biases.append(b.reshape(co, 1).astype(jnp.float32))       # [co, 1]

    params = {"weights_t": weights_t, "biases": biases}

    out = full_connected_conv1d_forward(embeddings, params, tile_n=TILE_N)
    out = jax.block_until_ready(out)

    ref = full_connected_conv1d_ref(embeddings, params)
    assert out.shape == (B, channels[-1], N)
    assert bool(jnp.all(jnp.isfinite(out)))
    # bf16 matmul operands -> relaxed tolerance vs the (same-math) reference.
    np.testing.assert_allclose(np.asarray(out), np.asarray(ref), rtol=1e-2, atol=1e-2)
    print("KERNEL_OK")
</pallas_src>

<mosaic_0001>
module attributes {stable_mosaic.version = 11 : i64} {
  func.func @kernel(%arg0: i32, %arg1: i32, %arg2: memref<1x16x512xf32, #tpu.memory_space<vmem>>, %arg3: memref<64x16xbf16, #tpu.memory_space<vmem>>, %arg4: memref<64x1xf32, #tpu.memory_space<vmem>>, %arg5: memref<64x64xbf16, #tpu.memory_space<vmem>>, %arg6: memref<64x1xf32, #tpu.memory_space<vmem>>, %arg7: memref<128x64xbf16, #tpu.memory_space<vmem>>, %arg8: memref<128x1xf32, #tpu.memory_space<vmem>>, %arg9: memref<1x128x512xf32, #tpu.memory_space<vmem>>) attributes {dimension_semantics = [#tpu.dimension_semantics<parallel>, #tpu.dimension_semantics<parallel>], iteration_bounds = array<i64: 2, 4>, scalar_prefetch = 0 : i64, scratch_operands = 0 : i64, tpu.core_type = #tpu.core_type<tc>, window_params = [{transform_indices = @transform_0, window_bounds = array<i64: 1, 16, 512>}, {pipeline_mode = #tpu.pipeline_mode<synchronous>, transform_indices = @transform_1, window_bounds = array<i64: 64, 16>}, {pipeline_mode = #tpu.pipeline_mode<synchronous>, transform_indices = @transform_2, window_bounds = array<i64: 64, 1>}, {pipeline_mode = #tpu.pipeline_mode<synchronous>, transform_indices = @transform_3, window_bounds = array<i64: 64, 64>}, {pipeline_mode = #tpu.pipeline_mode<synchronous>, transform_indices = @transform_4, window_bounds = array<i64: 64, 1>}, {pipeline_mode = #tpu.pipeline_mode<synchronous>, transform_indices = @transform_5, window_bounds = array<i64: 128, 64>}, {pipeline_mode = #tpu.pipeline_mode<synchronous>, transform_indices = @transform_6, window_bounds = array<i64: 128, 1>}, {transform_indices = @transform_7, window_bounds = array<i64: 1, 128, 512>}]} {
    %c0 = arith.constant 0 : index
    %c0_0 = arith.constant 0 : index
    %c0_1 = arith.constant 0 : index
    %0 = vector.load %arg2[%c0, %c0_0, %c0_1] : memref<1x16x512xf32, #tpu.memory_space<vmem>>, vector<1x16x512xf32>
    %1 = vector.shape_cast %0 : vector<1x16x512xf32> to vector<16x512xf32>
    %2 = arith.truncf %1 : vector<16x512xf32> to vector<16x512xbf16>
    %c0_2 = arith.constant 0 : index
    %c0_3 = arith.constant 0 : index
    %3 = vector.load %arg3[%c0_2, %c0_3] : memref<64x16xbf16, #tpu.memory_space<vmem>>, vector<64x16xbf16>
    %c0_4 = arith.constant 0 : index
    %c0_5 = arith.constant 0 : index
    %4 = vector.load %arg4[%c0_4, %c0_5] : memref<64x1xf32, #tpu.memory_space<vmem>>, vector<64x1xf32>
    %cst = arith.constant dense<0.000000e+00> : vector<64x512xf32>
    %5 = tpu.matmul %3, %2, %cst {dimension_numbers = #tpu.dot_dimension_numbers<[1], [0], [0], [1], [0, 0, 1, 1], [], []>} : vector<64x16xbf16>, vector<16x512xbf16>, vector<64x512xf32> -> vector<64x512xf32>
    %6 = vector.broadcast %4 : vector<64x1xf32> to vector<64x512xf32>
    %7 = arith.addf %5, %6 : vector<64x512xf32>
    %cst_6 = arith.constant 0.000000e+00 : f32
    %8 = vector.broadcast %cst_6 : f32 to vector<64x512xf32>
    %9 = arith.maximumf %7, %8 : vector<64x512xf32>
    %10 = arith.truncf %9 : vector<64x512xf32> to vector<64x512xbf16>
    %c0_7 = arith.constant 0 : index
    %c0_8 = arith.constant 0 : index
    %11 = vector.load %arg5[%c0_7, %c0_8] : memref<64x64xbf16, #tpu.memory_space<vmem>>, vector<64x64xbf16>
    %c0_9 = arith.constant 0 : index
    %c0_10 = arith.constant 0 : index
    %12 = vector.load %arg6[%c0_9, %c0_10] : memref<64x1xf32, #tpu.memory_space<vmem>>, vector<64x1xf32>
    %cst_11 = arith.constant dense<0.000000e+00> : vector<64x512xf32>
    %13 = tpu.matmul %11, %10, %cst_11 {dimension_numbers = #tpu.dot_dimension_numbers<[1], [0], [0], [1], [0, 0, 1, 1], [], []>} : vector<64x64xbf16>, vector<64x512xbf16>, vector<64x512xf32> -> vector<64x512xf32>
    %14 = vector.broadcast %12 : vector<64x1xf32> to vector<64x512xf32>
    %15 = arith.addf %13, %14 : vector<64x512xf32>
    %cst_12 = arith.constant 0.000000e+00 : f32
    %16 = vector.broadcast %cst_12 : f32 to vector<64x512xf32>
    %17 = arith.maximumf %15, %16 : vector<64x512xf32>
    %18 = arith.truncf %17 : vector<64x512xf32> to vector<64x512xbf16>
    %c0_13 = arith.constant 0 : index
    %c0_14 = arith.constant 0 : index
    %19 = vector.load %arg7[%c0_13, %c0_14] : memref<128x64xbf16, #tpu.memory_space<vmem>>, vector<128x64xbf16>
    %c0_15 = arith.constant 0 : index
    %c0_16 = arith.constant 0 : index
    %20 = vector.load %arg8[%c0_15, %c0_16] : memref<128x1xf32, #tpu.memory_space<vmem>>, vector<128x1xf32>
    %cst_17 = arith.constant dense<0.000000e+00> : vector<128x512xf32>
    %21 = tpu.matmul %19, %18, %cst_17 {dimension_numbers = #tpu.dot_dimension_numbers<[1], [0], [0], [1], [0, 0, 1, 1], [], []>} : vector<128x64xbf16>, vector<64x512xbf16>, vector<128x512xf32> -> vector<128x512xf32>
    %22 = vector.broadcast %20 : vector<128x1xf32> to vector<128x512xf32>
    %23 = arith.addf %21, %22 : vector<128x512xf32>
    %c0_18 = arith.constant 0 : index
    %c0_19 = arith.constant 0 : index
    %c0_20 = arith.constant 0 : index
    %24 = vector.load %arg9[%c0_18, %c0_19, %c0_20] : memref<1x128x512xf32, #tpu.memory_space<vmem>>, vector<1x128x512xf32>
    %25 = vector.shape_cast %24 : vector<1x128x512xf32> to vector<128x512xf32>
    %26 = vector.shape_cast %23 : vector<128x512xf32> to vector<1x128x512xf32>
    tpu.vector_store %arg9[%c0_18, %c0_19, %c0_20], %26 {strides = array<i32>} : memref<1x128x512xf32, #tpu.memory_space<vmem>>, vector<1x128x512xf32>,
    return
  }
  func.func @transform_0(%arg0: i32, %arg1: i32) -> (i32, i32, i32) {
    %c0_i32 = arith.constant 0 : i32
    %c0_i32_0 = arith.constant 0 : i32
    return %arg0, %c0_i32, %arg1 : i32, i32, i32
  }
  func.func @transform_1(%arg0: i32, %arg1: i32) -> (i32, i32) {
    %c0_i32 = arith.constant 0 : i32
    %c0_i32_0 = arith.constant 0 : i32
    %c0_i32_1 = arith.constant 0 : i32
    return %c0_i32, %c0_i32_0 : i32, i32
  }
  func.func @transform_2(%arg0: i32, %arg1: i32) -> (i32, i32) {
    %c0_i32 = arith.constant 0 : i32
    %c0_i32_0 = arith.constant 0 : i32
    %c0_i32_1 = arith.constant 0 : i32
    return %c0_i32, %c0_i32_0 : i32, i32
  }
  func.func @transform_3(%arg0: i32, %arg1: i32) -> (i32, i32) {
    %c0_i32 = arith.constant 0 : i32
    %c0_i32_0 = arith.constant 0 : i32
    %c0_i32_1 = arith.constant 0 : i32
    return %c0_i32, %c0_i32_0 : i32, i32
  }
  func.func @transform_4(%arg0: i32, %arg1: i32) -> (i32, i32) {
    %c0_i32 = arith.constant 0 : i32
    %c0_i32_0 = arith.constant 0 : i32
    %c0_i32_1 = arith.constant 0 : i32
    return %c0_i32, %c0_i32_0 : i32, i32
  }
  func.func @transform_5(%arg0: i32, %arg1: i32) -> (i32, i32) {
    %c0_i32 = arith.constant 0 : i32
    %c0_i32_0 = arith.constant 0 : i32
    %c0_i32_1 = arith.constant 0 : i32
    return %c0_i32, %c0_i32_0 : i32, i32
  }
  func.func @transform_6(%arg0: i32, %arg1: i32) -> (i32, i32) {
    %c0_i32 = arith.constant 0 : i32
    %c0_i32_0 = arith.constant 0 : i32
    %c0_i32_1 = arith.constant 0 : i32
    return %c0_i32, %c0_i32_0 : i32, i32
  }
  func.func @transform_7(%arg0: i32, %arg1: i32) -> (i32, i32, i32) {
    %c0_i32 = arith.constant 0 : i32
    %c0_i32_0 = arith.constant 0 : i32
    return %arg0, %c0_i32, %arg1 : i32, i32, i32
  }
}

</mosaic_0001>

<bundles_post_ra>
// kernel: tpu_custom_call.1
= control target key start
LH: loop header
LB: loop body
LE: loop exit
PB: predicated region body
PF: predicated region fallthrough
CT: control target
= control target key end

     0   :  { %s2393_s0 = inlined_call_operand.hbm [shape: f32[2,16,2048], index: 0, kind: input, shape index: {}]   ;;  %s2394_s1 = inlined_call_operand.vmem [shape: bf16[64,16], index: 1, kind: input, shape index: {}]   ;;  %s2395_s2 = inlined_call_operand.vmem [shape: f32[64,1], index: 2, kind: input, shape index: {}]   ;;  %s2396_s3 = inlined_call_operand.hbm [shape: bf16[64,64], index: 3, kind: input, shape index: {}]   ;;  %s2397_s4 = inlined_call_operand.vmem [shape: f32[64,1], index: 4, kind: input, shape index: {}]   ;;  %s2398_s5 = inlined_call_operand.vmem [shape: bf16[128,64], index: 5, kind: input, shape index: {}]   ;;  %s2399_s6 = inlined_call_operand.vmem [shape: f32[128,1], index: 6, kind: input, shape index: {}]   ;;  %s2400_s7 = inlined_call_operand.hbm [shape: f32[2,128,2048], index: 7, kind: output, shape index: {}]  }
   0x1   :  { %2416 = sst [smem:[#allocation18_spill]] %s2396_s3 }
   0x2   :  { %2417 = sst [smem:[#allocation19_spill]] %s2400_s7 }
   0x3   :  { %12 = vsyncpa [#allocation3], 0 }
   0x4   :  { %14 = vsyncpa [#allocation3 + $0x1], 0 }
   0x5   :  { %15 = vsyncpa [#allocation6], 0 }
   0x6   :  { %16 = vsyncpa [#allocation4], 0 }
   0x7   :  { %18 = vsyncpa [#allocation4 + $0x1], 0  ;;  %s1890_s24 = smov 0   ;;  %s1892_s25 = smov 0  }
   0x8   :  { %s1894_s26 = smov 0   ;;  %s1896_s27 = smov 0  }
   0x9   :  { %s1898_s28 = smov 0   ;;  %s1900_s29 = smov 0  }
   0xa   :  { %s1902_s30 = smov 0   ;;  %s1904_s8 = smov 0  }
   0xb LB: > { %2418 = sst [smem:[#allocation11_spill]] %s1808_s24  ;;  %s1493_s9 = sadd.s32 4294967295, %s1836_s8   ;;  %s1836_s8 = sphi %s1904_s8, %s24_s8   ;;  %s1832_s30 = sphi %s1902_s30, %s2454_s30   ;;  %s1828_s29 = sphi %s1900_s29, %s2453_s29   ;;  %s1824_s28 = sphi %s1898_s28, %s2452_s28   ;;  %s1820_s27 = sphi %s1896_s27, %s2447_s27   ;;  %s1816_s26 = sphi %s1894_s26, %s2451_s26   ;;  %s1812_s25 = sphi %s1892_s25, %s2450_s25   ;;  %s1808_s24 = sphi %s1890_s24, %s2449_s24  }
   0xc   : > { %2419 = sst [smem:[#allocation12_spill]] %s1824_s28  ;;  %s1494_s10 = sadd.s32 4294967294, %s1836_s8  }
   0xd   : > { %2420 = sst [smem:[#allocation13_spill]] %s1828_s29  ;;  %p52_p0 = scmp.ne.s32.totalorder %s1816_s26, %s1812_s25 }
   0xe   : > { %2421 = sst [smem:[#allocation14_spill]] %s1836_s8  ;;  %p53_p1 = scmp.eq.s32.totalorder %s1836_s8, 0 }
   0xf   : > { %p58_p2 = scmp.ne.s32.totalorder %s1812_s25, %s1808_s24  ;;  %p1938_p3 = scmp.eq.s32.totalorder %s1493_s9, 0 }
  0x10   : > { %p210_p4 = scmp.eq.s32.totalorder %s1493_s9, 7  ;;  %p1942_p5 = por %p53_p1, %p52_p0 }
  0x11   : > { %s2422_s12 = scalar_select %p1938_p3, 1, 0 }
  0x12   : > { %p216_p6 = scmp.eq.s32.totalorder %s1494_s10, 7  ;;  %p1948_p7 = por %p1938_p3, %p58_p2 }
  0x13   : > { %p1952_p8 = por %p210_p4, %p52_p0  ;;  %p1495_p10 = scmp.ge.s32.totalorder %s1836_s8, 1 }
  0x14   : > { %s2424_s14 = scalar_select %p1948_p7, 1, 0 }
  0x15   : > { %s2425_s15 = scalar_select %p1952_p8, 1, 0 }
  0x16   : > { %p1956_p9 = por %p216_p6, %p58_p2  ;;  %p223_p11 = scmp.lt.s32.totalorder %s1836_s8, 9 }
  0x17   : > { %2426 = sst [smem:[#allocation15_spill]] %s2425_s15  ;;  %s1838_s18 = smov [#allocation5]  }
  0x18   : > { %s2427_s16 = scalar_select %p1956_p9, 1, 0 }
  0x19   : > { %p1962_p12 = pnand %p1495_p10, %p223_p11  ;;  %s241_s19 = sshll.u32 %s1838_s18, 4  ;;  %s242_s19 = int_to_ptr.vmem [resolvable:$true] %s241_s19 }
  0x1a   : > { %2428 = sst [smem:[#allocation16_spill]] %s2427_s16  ;;  %p1581_p0 = scmp.lt.s32.totalorder %s1836_s8, 8 }
  0x1b   : > { %s2429_s17 = scalar_select %p1962_p12, 1, 0 }
  0x1c   : > { %p1568_p13 = pneg %p1962_p12  ;;  %p1977_p2 = pnand %p1581_p0, %p1942_p5 }
  0x1d   : > { %s2432_s3 = sld [smem:[#allocation18_spill]] }
  0x1e   : > { %p1971_p1 = pnand %p1568_p13, %p1938_p3 }
  0x1f   : > { %s2431_s21 = scalar_select %p1977_p2, 1, 0 }
  0x20   : > { %p1678_p6 = pneg %p1971_p1 }
  0x23   : > { %s1676_s9 = scalar_lea.hbm %s2432_s3, 512 }
  0x24   : > { %p1677_p4 = scmp.ne.s32.totalorder %s2432_s3, %s1676_s9  ;;  %p1683_p13 = scmp.lt.u32.totalorder %s1676_s9, %s2432_s3 }
  0x26   : > { %p1679_p10 = pnand %p1678_p6, %p1677_p4 }
  0x28   : > { %p1680_p11 = pneg %p1679_p10 }
  0x2a   : > { %p1685_p5 = pnand %p1683_p13, %p1680_p11 }
  0x2c   : > { %1688 = shalt.err (!%p1685_p5)
}
  0x2d   : > { %s1689_s13 = scalar_lea.vmem %s242_s19, 512  ;;  %p1697_p3 = scmp.lt.s32.totalorder %s242_s19, %s242_s19 }
  0x2e   : > { %p1690_p0 = scmp.ne.s32.totalorder %s242_s19, %s1689_s13  ;;  %p1698_p7 = scmp.lt.s32.totalorder %s1689_s13, %s1689_s13 }
  0x30   : > { %p1692_p9 = pnand %p1690_p0, %p1678_p6  ;;  %p1699_p12 = por %p1698_p7, %p1697_p3 }
  0x32   : > { %p1693_p8 = pneg %p1692_p9 }
  0x34   : > { %p1700_p2 = pnand %p1699_p12, %p1693_p8 }
  0x36   : > { %1703 = shalt.err (!%p1700_p2)
}
  0x37   : > { %s1839_s22 = smov 64   ;;  %s1840_s11 = smov 4  }
  0x38   : > { %1571 = dma.hbm_to_vmem [thread:$0]  (!%p1971_p1), %s2432_s3, 512, %s242_s19, [#allocation6], %s1839_s22, %s1839_s22, %s1840_s11  }
  0x39   : > { %s33_s9 = sadd.s32 1, %s1828_s29  ;;  %s36_s10 = sadd.s32 1, %s1832_s30 }
  0x3a   : > { %p34_p3 = scmp.ge.s32.totalorder %s33_s9, 4  ;;  %s264_s18 = sand.u32 1, %s1816_s26  }
  0x3b   : > { %s1499_s13 = sshll.u32 %s1828_s29, 2  ;;  %s1498_s8 = sshll.u32 %s264_s18, 6 }
  0x3c   : > { %s2456_s9 = smov (%p34_p3, %s33_s9), 0  ;;  %s2458_s10 = smov (!%p34_p3, %s36_s10), %s1832_s30 }
  0x3d   : > { %2433 = sst [smem:[#allocation17_spill]] %s2456_s9  ;;  %s41_s24 = ssub.s32 %s1828_s29, %s2456_s9 }
  0x3e   : > { %p38_p7 = scmp.ge.s32.totalorder %s2458_s10, 2  ;;  %s1500_s20 = sshll.u32 %s1832_s30, 5 }
  0x3f   : > { %s274_s19 = sadd.s32 %s1500_s20, %s1499_s13  ;;  %s268_s22 = scalar_lea.vmem [#allocation2], %s1498_s8 }
  0x40   : > { %s2460_s10 = smov (%p38_p7, %s2458_s10), 0  ;;  %s277_s11 = sshll.u32 %s268_s22, 4  ;;  %s2016_s11 = int_to_ptr.vmem [resolvable:$true] %s277_s11 }
  0x41   : > { %s40_s16 = ssub.s32 %s1832_s30, %s2460_s10  ;;  %s1501_s23 = sshll.u32 %s274_s19, 7 }
  0x42   : > { %s42_s3 = sor.u32 %s41_s24, %s40_s16  ;;  %s2014_s28 = scalar_lea.hbm %s2393_s0, %s1501_s23 }
  0x43   : > { %p43_p8 = scmp.eq.s32.totalorder %s42_s3, 0  ;;  %s2434_s9 = sadd.s32 1, %s1816_s26 }
  0x44   : > { %s2023_s8 = scalar_lea.sflag [#allocation3], %s264_s18  ;;  %s1704_s13 = scalar_lea.hbm %s2014_s28, 1024 }
  0x45   : > { %s2021_s29 = scalar_select %p43_p8, %s1816_s26, %s2434_s9  }
  0x46   : > { %p1705_p9 = scmp.ne.s32.totalorder %s2014_s28, %s1704_s13  ;;  %p2435_p12 = scmp.ne.s32.totalorder %s2431_s21, 0 }
  0x47   : > { %s1709_s15 = scalar_lea.hbm %s2393_s0, 8192  ;;  %p1710_p6 = scmp.lt.u32.totalorder %s2014_s28, %s2393_s0 }
  0x48   : > { %p1706_p1 = pneg %p2435_p12  ;;  %p1711_p10 = scmp.lt.u32.totalorder %s1709_s15, %s1704_s13 }
  0x49   : > { %p1713_p13 = scmp.lt.u32.totalorder %s1704_s13, %s2014_s28 }
  0x4a   : > { %p1707_p2 = pnand %p1706_p1, %p1705_p9  ;;  %p1712_p11 = por %p1711_p10, %p1710_p6 }
  0x4c   : > { %p1708_p4 = pneg %p1707_p2  ;;  %p1714_p5 = por %p1713_p13, %p1712_p11 }
  0x4e   : > { %p1715_p0 = pnand %p1714_p5, %p1708_p4 }
  0x50   : > { %1718 = shalt.err (!%p1715_p0)
}
  0x51   : > { %s1719_s9 = scalar_lea.vmem %s2016_s11, 1024  ;;  %s1841_s18 = smov [#allocation2]  }
  0x52   : > { %p1720_p3 = scmp.ne.s32.totalorder %s2016_s11, %s1719_s9  ;;  %s1724_s19 = sshll.u32 %s1841_s18, 4  ;;  %s1725_s19 = int_to_ptr.vmem [resolvable:$false] %s1724_s19 }
  0x53   : > { %s1726_s22 = scalar_lea.vmem %s1725_s19, 2048  ;;  %p1727_p9 = scmp.lt.s32.totalorder %s2016_s11, %s1725_s19 }
  0x54   : > { %p1722_p7 = pnand %p1720_p3, %p1706_p1  ;;  %p1728_p2 = scmp.lt.s32.totalorder %s1726_s22, %s1719_s9 }
  0x56   : > { %p1723_p8 = pneg %p1722_p7  ;;  %p1729_p6 = por %p1728_p2, %p1727_p9 }
  0x58   : > { %p1730_p10 = pnand %p1729_p6, %p1723_p8 }
  0x5a   : > { %1733 = shalt.err (!%p1730_p10)
}
  0x5b   : > { %s1842_s16 = smov 2048   ;;  %s1843_s23 = smov 512  }
  0x5c   : > { %s1844_s13 = smov 32   ;;  %p2436_p1 = scmp.ne.s32.totalorder %s2429_s17, 0 }
  0x5d   : > { %1575 = dma.hbm_to_vmem [thread:$0]  (!%p2435_p12), %s2014_s28, 1024, %s2016_s11, %s2023_s8, %s1842_s16, %s1843_s23, %s1844_s13  }
  0x5e   : > { %289 = sbr.rel (%p2436_p1) target bundleno = 901 (0x385), region = 48  ;;  %s2054_s7 = sand.u32 (!%p2436_p1), 1, %s1812_s25  }
  0x5f   : > { %s1503_s24 = sshll.u32 (!%p2436_p1), %s2054_s7, 6  ;;  %s292_s15 = scalar_lea.sflag (!%p2436_p1), [#allocation3], %s2054_s7 }
  0x60   : > { %s295_s3 = scalar_lea.vmem (!%p2436_p1), [#allocation2], %s1503_s24  ;;  %p2437_p4 = scmp.ne.s32.totalorder (!%p2436_p1), %s2424_s14, 0 }
  0x65   : > { %1795 = dma.done.wait (%p2437_p4), %s292_s15, 1024  }
  0x66   : > { %1797 = vsyncadd (%p2437_p4), %s292_s15, 4294966272  ;;  %p2438_p11 = scmp.ne.s32.totalorder %s2422_s12, 0 }
  0x68   : > { %1799 = dma.done.wait (%p2438_p11), [#allocation6], 512  }
  0x69   : > { %1801 = vsyncadd (%p2438_p11), [#allocation6], 4294966784  ;;  %v1845_v0 = vmov 0   ;;  %v334_v1 = vld [vmem:[%s295_s3 + $0x8] sm:$0xff]  ;;  %v336_v3 = vld [vmem:[%s295_s3 + $0x18] sm:$0xff]  ;;  %vm421_vm0 = vcmask 130048  }
  0x6a   : > { %466 = vmatprep.mubr.bf16.mxu0 %v1845_v0  ;;  %539 = vmatprep.mubr.bf16.mxu1 %v1845_v0  ;;  %v338_v2 = vld [vmem:[%s295_s3 + $0x28] sm:$0xff]  ;;  %v340_v5 = vld [vmem:[%s295_s3 + $0x38] sm:$0xff]  ;;  %v333_v6 = vld [vmem:[%s295_s3] sm:$0xff]  ;;  %vm704_vm1 = vcmask 523264   ;;  %s1505_s15 = sshll.u32 %s2054_s7, 9  ;;  %s2439_s28 = sld [smem:[#allocation12_spill]] }
  0x6b   : > { %1658 = vset.pattern.permute.xlu0 %v1845_v0  ;;  %1659 = vset.pattern.permute.xlu1 %v1845_v0  ;;  %v342_v4 = vpack.c.bf16 %v338_v2, %v334_v1  ;;  %v337_v7 = vld [vmem:[%s295_s3 + $0x20] sm:$0xff]  ;;  %v344_v8 = vpack.c.bf16 %v340_v5, %v336_v3  ;;  %v335_v10 = vld [vmem:[%s295_s3 + $0x10] sm:$0xff]  ;;  %v354_v15 = vld [vmem:[%s2395_s2 + $0x8] sm:$0xff]  ;;  %s1555_s12 = sshll.u32 %s1820_s27, 2  ;;  %s2440_s20 = sld [smem:[#allocation19_spill]] }
  0x6c   : > { %v341_v9 = vpack.c.bf16 %v337_v7, %v333_v6  ;;  %v339_v11 = vld [vmem:[%s295_s3 + $0x30] sm:$0xff]  ;;  %v1660_v13 = vld [vmem:[%s2394_s1] sm:$0xff]   ;;  %v356_v17 = vld [vmem:[%s2395_s2 + $0x18] sm:$0xff]  ;;  %s2265_s3 = scalar_lea.vmem [#allocation7], %s1505_s15  ;;  %s2441_s18 = sld [smem:[#allocation15_spill]] }
  0x6d   : > { %434 = vmatprep.subr.bf16.mxu0 %v342_v4  ;;  %v343_v12 = vpack.c.bf16 %v339_v11, %v335_v10  ;;  %507 = vmatprep.subr.bf16.mxu1 %v344_v8  ;;  %v353_v14 = vld [vmem:[%s2395_s2] sm:$0xff]  ;;  %v355_v16 = vld [vmem:[%s2395_s2 + $0x10] sm:$0xff]  ;;  %v1661_v18 = vld [vmem:[%s2394_s1 + $0x8] sm:$0xff]   ;;  %s1393_s21 = sshll.u32 %s2265_s3, 4  ;;  %s1378_s19 = scalar_lea.sflag [#allocation4], %s2054_s7  ;;  %s2334_s21 = int_to_ptr.vmem [resolvable:$true] %s1393_s21 }
  0x6e   : > { %435 = vmatpush1.bf16.msra.mxu0 %v341_v9  ;;  %363 = vperm.xlu0 %1658, %v353_v14   ;;  %v357_v19 = vld [vmem:[%s2395_s2 + $0x20] sm:$0xff]  ;;  %v358_v20 = vld [vmem:[%s2395_s2 + $0x28] sm:$0xff]  ;;  %v359_v21 = vld [vmem:[%s2395_s2 + $0x30] sm:$0xff]  ;;  %s1734_s22 = scalar_lea.vmem %s2334_s21, 8192  ;;  %s1846_s16 = smov [#allocation7]  }
  0x6f   : > { %508 = vmatpush1.bf16.msra.mxu1 %v343_v12  ;;  %373 = vperm.xlu1 %1659, %v355_v16   ;;  %v1662_v22 = vld [vmem:[%s2394_s1 + $0x10] sm:$0xff]   ;;  %v636_v23 = vld [vmem:[%s2397_s4] sm:$0xff]  ;;  %v360_v24 = vld [vmem:[%s2395_s2 + $0x38] sm:$0xff]  ;;  %p1735_p12 = scmp.ne.s32.totalorder %s2334_s21, %s1734_s22  ;;  %s1738_s23 = sshll.u32 %s1846_s16, 4  ;;  %s1739_s23 = int_to_ptr.vmem [resolvable:$false] %s1738_s23 }
  0x70   : > { %v637_v25 = vld [vmem:[%s2397_s4 + $0x8] sm:$0xff]  ;;  %v638_v26 = vld [vmem:[%s2397_s4 + $0x10] sm:$0xff]  ;;  %v639_v27 = vld [vmem:[%s2397_s4 + $0x18] sm:$0xff]  ;;  %s1556_s14 = sshll.u32 %s2439_s28, 8  ;;  %s1740_s13 = scalar_lea.vmem %s1739_s23, 16384 }
  0x71   : > { %1510 = vmatmul.mubr.msk.bf16.vlgmr.msra.gmra.mrb[0].mxu0 %vm421_vm0, %v1660_v13  ;;  %v1663_v28 = vld [vmem:[%s2394_s1 + $0x18] sm:$0xff]   ;;  %v640_v29 = vld [vmem:[%s2397_s4 + $0x20] sm:$0xff]  ;;  %v641_v30 = vld [vmem:[%s2397_s4 + $0x28] sm:$0xff]  ;;  %s1390_s17 = sadd.s32 %s1556_s14, %s1555_s12  ;;  %p1741_p3 = scmp.lt.s32.totalorder %s2334_s21, %s1739_s23 }
  0x72   : > { %1514 = vmatmul.mubr.msk.bf16.vlgmr.msra.gmra.mrb[0].mxu1 %vm421_vm0, %v1660_v13  ;;  %476 = vmatprep.mubr.bf16.mxu0 %v1845_v0  ;;  %v642_v31 = vld [vmem:[%s2397_s4 + $0x30] sm:$0xff]  ;;  %v643_v32 = vld [vmem:[%s2397_s4 + $0x38] sm:$0xff]  ;;  %v927_v33 = vld [vmem:[%s2399_s6] sm:$0xff]  ;;  %s1557_s27 = sshll.u32 %s1390_s17, 7  ;;  %p2442_p13 = scmp.ne.s32.totalorder %s2441_s18, 0 }
  0x73   : > { %549 = vmatprep.mubr.bf16.mxu1 %v1845_v0  ;;  %368 = vperm.xlu0 %1658, %v354_v15   ;;  %v928_v34 = vld [vmem:[%s2399_s6 + $0x8] sm:$0xff]  ;;  %v929_v35 = vld [vmem:[%s2399_s6 + $0x10] sm:$0xff]  ;;  %v930_v36 = vld [vmem:[%s2399_s6 + $0x18] sm:$0xff]  ;;  %s2330_s9 = scalar_lea.hbm %s2440_s20, %s1557_s27  ;;  %p1742_p7 = scmp.lt.s32.totalorder %s1740_s13, %s1734_s22 }
  0x74   : > { %378 = vperm.xlu1 %1659, %v356_v17   ;;  %v931_v37 = vld [vmem:[%s2399_s6 + $0x20] sm:$0xff]  ;;  %v932_v38 = vld [vmem:[%s2399_s6 + $0x28] sm:$0xff]  ;;  %v933_v39 = vld [vmem:[%s2399_s6 + $0x30] sm:$0xff]  ;;  %p1736_p5 = pnand %p1735_p12, %p2442_p13 }
  0x75   : > { %v934_v40 = vld [vmem:[%s2399_s6 + $0x38] sm:$0xff]  ;;  %v935_v41 = vld [vmem:[%s2399_s6 + $0x40] sm:$0xff]  ;;  %v936_v42 = vld [vmem:[%s2399_s6 + $0x48] sm:$0xff]  ;;  %p1743_p8 = por %p1742_p7, %p1741_p3 }
  0x76   : > { %v937_v43 = vld [vmem:[%s2399_s6 + $0x50] sm:$0xff]  ;;  %v938_v44 = vld [vmem:[%s2399_s6 + $0x58] sm:$0xff]  ;;  %v939_v45 = vld [vmem:[%s2399_s6 + $0x60] sm:$0xff]  ;;  %p1737_p0 = pneg %p1736_p5 }
  0x77   : > { %383 = vperm.xlu0 %1658, %v357_v19   ;;  %v940_v46 = vld [vmem:[%s2399_s6 + $0x68] sm:$0xff]  ;;  %v941_v47 = vld [vmem:[%s2399_s6 + $0x70] sm:$0xff]  ;;  %v942_v48 = vld [vmem:[%s2399_s6 + $0x78] sm:$0xff] }
  0x78   : > { %388 = vperm.xlu1 %1659, %v358_v20   ;;  %p1744_p9 = pnand %p1743_p8, %p1737_p0 }
  0x79   : > { %1511 = vmatmul.mubr.msk.bf16.gmra.mrb[4].mxu0 %vm421_vm0, %v1661_v18 }
  0x7a   : > { %1515 = vmatmul.mubr.msk.bf16.gmra.mrb[4].mxu1 %vm421_vm0, %v1661_v18  ;;  %486 = vmatprep.mubr.bf16.mxu0 %v1845_v0 }
  0x7b   : > { %559 = vmatprep.mubr.bf16.mxu1 %v1845_v0  ;;  %393 = vperm.xlu0 %1658, %v359_v21  }
  0x7c   : > { %398 = vperm.xlu1 %1659, %v360_v24  }
  0x7f   : > { %646 = vperm.xlu0 %1658, %v636_v23  }
  0x80   : > { %651 = vperm.xlu1 %1659, %v637_v25  }
  0x81   : > { %1512 = vmatmul.mubr.msk.bf16.gmra.mrb[8].mxu0 %vm421_vm0, %v1662_v22 }
  0x82   : > { %1516 = vmatmul.mubr.msk.bf16.gmra.mrb[8].mxu1 %vm421_vm0, %v1662_v22  ;;  %496 = vmatprep.mubr.bf16.mxu0 %v1845_v0 }
  0x83   : > { %569 = vmatprep.mubr.bf16.mxu1 %v1845_v0  ;;  %656 = vperm.xlu0 %1658, %v638_v26  }
  0x84   : > { %661 = vperm.xlu1 %1659, %v639_v27  }
  0x87   : > { %666 = vperm.xlu0 %1658, %v640_v29  }
  0x88   : > { %671 = vperm.xlu1 %1659, %v641_v30  }
  0x89   : > { %1513 = vmatmul.mubr.msk.bf16.gmra.mrb[12].mxu0 %vm421_vm0, %v1663_v28 }
  0x8a   : > { %1517 = vmatmul.mubr.msk.bf16.gmra.mrb[12].mxu1 %vm421_vm0, %v1663_v28  ;;  %749 = vmatprep.mubr.bf16.mxu0 %v1845_v0 }
  0x8b   : > { %822 = vmatprep.mubr.bf16.mxu1 %v1845_v0  ;;  %676 = vperm.xlu0 %1658, %v642_v31  }
  0x8c   : > { %681 = vperm.xlu1 %1659, %v643_v32  }
  0x8f   : > { %945 = vperm.xlu0 %1658, %v927_v33  }
  0x90   : > { %950 = vperm.xlu1 %1659, %v928_v34  }
  0x93   : > { %955 = vperm.xlu0 %1658, %v929_v35  }
  0x94   : > { %960 = vperm.xlu1 %1659, %v930_v36  }
  0x97   : > { %965 = vperm.xlu0 %1658, %v931_v37  }
  0x98   : > { %970 = vperm.xlu1 %1659, %v932_v38  }
  0x9b   : > { %975 = vperm.xlu0 %1658, %v933_v39  }
  0x9c   : > { %980 = vperm.xlu1 %1659, %v934_v40  }
  0x9f   : > { %985 = vperm.xlu0 %1658, %v935_v41  }
  0xa0   : > { %990 = vperm.xlu1 %1659, %v936_v42  }
  0xa3   : > { %995 = vperm.xlu0 %1658, %v937_v43  }
  0xa4   : > { %1000 = vperm.xlu1 %1659, %v938_v44  }
  0xa7   : > { %1005 = vperm.xlu0 %1658, %v939_v45  }
  0xa8   : > { %1010 = vperm.xlu1 %1659, %v940_v46  }
  0xab   : > { %1015 = vperm.xlu0 %1658, %v941_v47  }
  0xac   : > { %1020 = vperm.xlu1 %1659, %v942_v48  }
  0xed   : > { %v364_v49 = vpop.permute.xlu0 %363 }
  0xee   : > { %v374_v50 = vpop.permute.xlu1 %373 }
  0xf2   : > { %v369_v51 = vpop.permute.xlu0 %368 }
  0xf3   : > { %v379_v14 = vpop.permute.xlu1 %378 }
  0xf6   : > { %v384_v40 = vpop.permute.xlu0 %383 }
  0xf7   : > { %v389_v44 = vpop.permute.xlu1 %388 }
 0x144   : > { %v468_v52 = vpop.f32.mrb[0].mxu0 }
 0x145   : > { %v469_v53 = vadd.f32 %v468_v52, %v364_v49  ;;  %v541_v54 = vpop.f32.mrb[0].mxu1  ;;  %v470_v55 = vpop.f32.mrb[1].mxu0 }
 0x146   : > { %v542_v56 = vadd.f32 %v541_v54, %v364_v49  ;;  %v471_v57 = vadd.f32 %v470_v55, %v364_v49  ;;  %v543_v58 = vpop.f32.mrb[1].mxu1  ;;  %v472_v59 = vpop.f32.mrb[2].mxu0 }
 0x147   : > { %v544_v60 = vadd.f32 %v543_v58, %v364_v49  ;;  %v473_v61 = vadd.f32 %v472_v59, %v369_v51  ;;  %v545_v62 = vpop.f32.mrb[2].mxu1  ;;  %v474_v63 = vpop.f32.mrb[3].mxu0  ;;  %v580_v4 = vmax.f32 %v469_v53, 0.0 }
 0x148   : > { %v546_v1 = vadd.f32 %v545_v62, %v369_v51  ;;  %v475_v2 = vadd.f32 %v474_v63, %v369_v51  ;;  %v547_v3 = vpop.f32.mrb[3].mxu1  ;;  %v582_v7 = vmax.f32 %v542_v56, 0.0  ;;  %v581_v8 = vmax.f32 %v471_v57, 0.0 }
 0x149   : > { %v584_v5 = vmax.f32 %v473_v61, 0.0  ;;  %v548_v6 = vadd.f32 %v547_v3, %v369_v51  ;;  %v583_v11 = vmax.f32 %v544_v60, 0.0 }
 0x14a   : > { %v586_v9 = vmax.f32 %v546_v1, 0.0  ;;  %v585_v10 = vmax.f32 %v475_v2, 0.0 }
 0x14b   : > { %v612_v12 = vpack.c.bf16 %v584_v5, %v580_v4  ;;  %v587_v13 = vmax.f32 %v548_v6, 0.0 }
 0x14c   : > { %v614_v15 = vpack.c.bf16 %v586_v9, %v582_v7  ;;  %v613_v16 = vpack.c.bf16 %v585_v10, %v581_v8  ;;  %v478_v17 = vpop.f32.mrb[4].mxu0  ;;  %v394_v7 = vpop.permute.xlu0 %393 }
 0x14d   : > { %v615_v18 = vpack.c.bf16 %v587_v13, %v583_v11  ;;  %v479_v19 = vadd.f32 %v478_v17, %v374_v50  ;;  %v551_v20 = vpop.f32.mrb[4].mxu1  ;;  %v480_v21 = vpop.f32.mrb[5].mxu0 }
 0x14e   : > { %v552_v22 = vadd.f32 %v551_v20, %v374_v50  ;;  %v481_v23 = vadd.f32 %v480_v21, %v374_v50  ;;  %v553_v24 = vpop.f32.mrb[5].mxu1  ;;  %v482_v25 = vpop.f32.mrb[6].mxu0  ;;  %717 = vmatprep.subr.bf16.mxu0 %v613_v16 }
 0x14f   : > { %v554_v26 = vadd.f32 %v553_v24, %v374_v50  ;;  %v483_v27 = vadd.f32 %v482_v25, %v379_v14  ;;  %v555_v28 = vpop.f32.mrb[6].mxu1  ;;  %790 = vmatprep.subr.bf16.mxu1 %v615_v18  ;;  %v484_v29 = vpop.f32.mrb[7].mxu0  ;;  %718 = vmatpush1.bf16.msra.mxu0 %v612_v12  ;;  %v588_v33 = vmax.f32 %v479_v19, 0.0 }
 0x150   : > { %v556_v30 = vadd.f32 %v555_v28, %v379_v14  ;;  %v485_v31 = vadd.f32 %v484_v29, %v379_v14  ;;  %v557_v32 = vpop.f32.mrb[7].mxu1  ;;  %791 = vmatpush1.bf16.msra.mxu1 %v614_v15  ;;  %v590_v36 = vmax.f32 %v552_v22, 0.0  ;;  %v589_v37 = vmax.f32 %v481_v23, 0.0  ;;  %v399_v11 = vpop.permute.xlu1 %398 }
 0x151   : > { %v592_v34 = vmax.f32 %v483_v27, 0.0  ;;  %v558_v35 = vadd.f32 %v557_v32, %v379_v14  ;;  %v591_v41 = vmax.f32 %v554_v26, 0.0 }
 0x152   : > { %v594_v38 = vmax.f32 %v556_v30, 0.0  ;;  %v593_v39 = vmax.f32 %v485_v31, 0.0 }
 0x153   : > { %v616_v42 = vpack.c.bf16 %v592_v34, %v588_v33  ;;  %v595_v43 = vmax.f32 %v558_v35, 0.0 }
 0x154   : > { %v618_v45 = vpack.c.bf16 %v594_v38, %v590_v36  ;;  %v617_v46 = vpack.c.bf16 %v593_v39, %v589_v37  ;;  %v488_v47 = vpop.f32.mrb[8].mxu0 }
 0x155   : > { %v619_v48 = vpack.c.bf16 %v595_v43, %v591_v41  ;;  %v489_v49 = vadd.f32 %v488_v47, %v384_v40  ;;  %v561_v50 = vpop.f32.mrb[8].mxu1  ;;  %v490_v51 = vpop.f32.mrb[9].mxu0  ;;  %v1664_v43 = vld [vmem:[#allocation5] sm:$0xff]  }
 0x156   : > { %v562_v52 = vadd.f32 %v561_v50, %v384_v40  ;;  %v491_v53 = vadd.f32 %v490_v51, %v384_v40  ;;  %v563_v54 = vpop.f32.mrb[9].mxu1  ;;  %v492_v55 = vpop.f32.mrb[10].mxu0  ;;  %719 = vmatprep.subr.bf16.mxu0 %v617_v46  ;;  %v1667_v46 = vld [vmem:[#allocation5 + $0x18] sm:$0xff]  }
 0x157   : > { %v564_v56 = vadd.f32 %v563_v54, %v384_v40  ;;  %v493_v57 = vadd.f32 %v492_v55, %v389_v44  ;;  %v565_v58 = vpop.f32.mrb[10].mxu1  ;;  %792 = vmatprep.subr.bf16.mxu1 %v619_v48  ;;  %v494_v59 = vpop.f32.mrb[11].mxu0  ;;  %720 = vmatpush1.bf16.msra.mxu0 %v616_v42  ;;  %v596_v63 = vmax.f32 %v489_v49, 0.0 }
 0x158   : > { %v566_v60 = vadd.f32 %v565_v58, %v389_v44  ;;  %v495_v61 = vadd.f32 %v494_v59, %v389_v44  ;;  %v567_v62 = vpop.f32.mrb[11].mxu1  ;;  %793 = vmatpush1.bf16.msra.mxu1 %v618_v45  ;;  %v598_v3 = vmax.f32 %v562_v52, 0.0  ;;  %v597_v4 = vmax.f32 %v491_v53, 0.0  ;;  %v1666_v45 = vld [vmem:[#allocation5 + $0x10] sm:$0xff]   ;;  %v647_v47 = vpop.permute.xlu0 %646 }
 0x159   : > { %v600_v1 = vmax.f32 %v493_v57, 0.0  ;;  %v568_v2 = vadd.f32 %v567_v62, %v389_v44  ;;  %v599_v8 = vmax.f32 %v564_v56, 0.0  ;;  %v1665_v44 = vld [vmem:[#allocation5 + $0x8] sm:$0xff]   ;;  %v652_v48 = vpop.permute.xlu1 %651 }
 0x15a   : > { %v602_v5 = vmax.f32 %v566_v60, 0.0  ;;  %v601_v6 = vmax.f32 %v495_v61, 0.0 }
 0x15b   : > { %v620_v9 = vpack.c.bf16 %v600_v1, %v596_v63  ;;  %v603_v10 = vmax.f32 %v568_v2, 0.0 }
 0x15c   : > { %v622_v12 = vpack.c.bf16 %v602_v5, %v598_v3  ;;  %v621_v13 = vpack.c.bf16 %v601_v6, %v597_v4  ;;  %v498_v14 = vpop.f32.mrb[12].mxu0 }
 0x15d   : > { %v623_v15 = vpack.c.bf16 %v603_v10, %v599_v8  ;;  %v499_v16 = vadd.f32 %v498_v14, %v394_v7  ;;  %v571_v17 = vpop.f32.mrb[12].mxu1  ;;  %v500_v18 = vpop.f32.mrb[13].mxu0 }
 0x15e   : > { %v572_v19 = vadd.f32 %v571_v17, %v394_v7  ;;  %v501_v20 = vadd.f32 %v500_v18, %v394_v7  ;;  %v573_v21 = vpop.f32.mrb[13].mxu1  ;;  %v502_v22 = vpop.f32.mrb[14].mxu0  ;;  %721 = vmatprep.subr.bf16.mxu0 %v621_v13 }
 0x15f   : > { %v574_v23 = vadd.f32 %v573_v21, %v394_v7  ;;  %v503_v24 = vadd.f32 %v502_v22, %v399_v11  ;;  %v575_v25 = vpop.f32.mrb[14].mxu1  ;;  %794 = vmatprep.subr.bf16.mxu1 %v623_v15  ;;  %v504_v26 = vpop.f32.mrb[15].mxu0  ;;  %722 = vmatpush1.bf16.msra.mxu0 %v620_v9  ;;  %v604_v30 = vmax.f32 %v499_v16, 0.0 }
 0x160   : > { %v576_v27 = vadd.f32 %v575_v25, %v399_v11  ;;  %v505_v28 = vadd.f32 %v504_v26, %v399_v11  ;;  %v577_v29 = vpop.f32.mrb[15].mxu1  ;;  %795 = vmatpush1.bf16.msra.mxu1 %v622_v12  ;;  %v606_v33 = vmax.f32 %v572_v19, 0.0  ;;  %v605_v34 = vmax.f32 %v501_v20, 0.0  ;;  %v657_v8 = vpop.permute.xlu0 %656 }
 0x161   : > { %v608_v31 = vmax.f32 %v503_v24, 0.0  ;;  %v578_v32 = vadd.f32 %v577_v29, %v399_v11  ;;  %v607_v37 = vmax.f32 %v574_v23, 0.0  ;;  %v662_v12 = vpop.permute.xlu1 %661 }
 0x162   : > { %v610_v35 = vmax.f32 %v576_v27, 0.0  ;;  %v609_v36 = vmax.f32 %v505_v28, 0.0 }
 0x163   : > { %v624_v38 = vpack.c.bf16 %v608_v31, %v604_v30  ;;  %v611_v39 = vmax.f32 %v578_v32, 0.0 }
 0x164   : > { %v626_v40 = vpack.c.bf16 %v610_v35, %v606_v33  ;;  %v625_v41 = vpack.c.bf16 %v609_v36, %v605_v34 }
 0x165   : > { %v627_v42 = vpack.c.bf16 %v611_v39, %v607_v37 }
 0x166   : > { %723 = vmatprep.subr.bf16.mxu0 %v625_v41 }
 0x167   : > { %796 = vmatprep.subr.bf16.mxu1 %v627_v42  ;;  %724 = vmatpush1.bf16.msra.mxu0 %v624_v38  ;;  %v667_v38 = vpop.permute.xlu0 %666  ;;  %v672_v42 = vpop.permute.xlu1 %671 }
 0x168   : > { %797 = vmatpush1.bf16.msra.mxu1 %v626_v40 }
 0x16a   : > { %1522 = vmatmul.mubr.msk.bf16.vlgmr.msra.gmra.mrb[16].mxu0 %vm704_vm1, %v1664_v43 }
 0x16b   : > { %1526 = vmatmul.mubr.msk.bf16.vlgmr.msra.gmra.mrb[16].mxu1 %vm704_vm1, %v1664_v43  ;;  %759 = vmatprep.mubr.bf16.mxu0 %v1845_v0 }
 0x16c   : > { %832 = vmatprep.mubr.bf16.mxu1 %v1845_v0 }
 0x172   : > { %1523 = vmatmul.mubr.msk.bf16.gmra.mrb[20].mxu0 %vm704_vm1, %v1665_v44 }
 0x173   : > { %1527 = vmatmul.mubr.msk.bf16.gmra.mrb[20].mxu1 %vm704_vm1, %v1665_v44  ;;  %769 = vmatprep.mubr.bf16.mxu0 %v1845_v0 }
 0x174   : > { %842 = vmatprep.mubr.bf16.mxu1 %v1845_v0 }
 0x17a   : > { %1524 = vmatmul.mubr.msk.bf16.gmra.mrb[24].mxu0 %vm704_vm1, %v1666_v45 }
 0x17b   : > { %1528 = vmatmul.mubr.msk.bf16.gmra.mrb[24].mxu1 %vm704_vm1, %v1666_v45  ;;  %779 = vmatprep.mubr.bf16.mxu0 %v1845_v0 }
 0x17c   : > { %852 = vmatprep.mubr.bf16.mxu1 %v1845_v0 }
 0x182   : > { %1525 = vmatmul.mubr.msk.bf16.gmra.mrb[28].mxu0 %vm704_vm1, %v1667_v46 }
 0x183   : > { %1529 = vmatmul.mubr.msk.bf16.gmra.mrb[28].mxu1 %vm704_vm1, %v1667_v46  ;;  %1119 = vmatprep.mubr.bf16.mxu0 %v1845_v0 }
 0x184   : > { %1232 = vmatprep.mubr.bf16.mxu1 %v1845_v0 }
 0x23d   : > { %v751_v49 = vpop.f32.mrb[16].mxu0 }
 0x23e   : > { %v752_v50 = vadd.f32 %v751_v49, %v647_v47  ;;  %v824_v51 = vpop.f32.mrb[16].mxu1  ;;  %v753_v52 = vpop.f32.mrb[17].mxu0 }
 0x23f   : > { %v825_v53 = vadd.f32 %v824_v51, %v647_v47  ;;  %v754_v54 = vadd.f32 %v753_v52, %v647_v47  ;;  %v826_v55 = vpop.f32.mrb[17].mxu1  ;;  %v755_v56 = vpop.f32.mrb[18].mxu0 }
 0x240   : > { %v827_v57 = vadd.f32 %v826_v55, %v647_v47  ;;  %v756_v58 = vadd.f32 %v755_v56, %v652_v48  ;;  %v828_v59 = vpop.f32.mrb[18].mxu1  ;;  %v757_v60 = vpop.f32.mrb[19].mxu0  ;;  %v863_v1 = vmax.f32 %v752_v50, 0.0 }
 0x241   : > { %v829_v61 = vadd.f32 %v828_v59, %v652_v48  ;;  %v758_v62 = vadd.f32 %v757_v60, %v652_v48  ;;  %v830_v63 = vpop.f32.mrb[19].mxu1  ;;  %v865_v4 = vmax.f32 %v825_v53, 0.0  ;;  %v864_v5 = vmax.f32 %v754_v54, 0.0 }
 0x242   : > { %v867_v2 = vmax.f32 %v756_v58, 0.0  ;;  %v831_v3 = vadd.f32 %v830_v63, %v652_v48  ;;  %v866_v9 = vmax.f32 %v827_v57, 0.0 }
 0x243   : > { %v869_v6 = vmax.f32 %v829_v61, 0.0  ;;  %v868_v7 = vmax.f32 %v758_v62, 0.0 }
 0x244   : > { %v895_v10 = vpack.c.bf16 %v867_v2, %v863_v1  ;;  %v870_v11 = vmax.f32 %v831_v3, 0.0 }
 0x245   : > { %v897_v13 = vpack.c.bf16 %v869_v6, %v865_v4  ;;  %v896_v14 = vpack.c.bf16 %v868_v7, %v864_v5  ;;  %v761_v15 = vpop.f32.mrb[20].mxu0  ;;  %v677_v5 = vpop.permute.xlu0 %676 }
 0x246   : > { %v898_v16 = vpack.c.bf16 %v870_v11, %v866_v9  ;;  %v762_v17 = vadd.f32 %v761_v15, %v657_v8  ;;  %v834_v18 = vpop.f32.mrb[20].mxu1  ;;  %v763_v19 = vpop.f32.mrb[21].mxu0 }
 0x247   : > { %v835_v20 = vadd.f32 %v834_v18, %v657_v8  ;;  %v764_v21 = vadd.f32 %v763_v19, %v657_v8  ;;  %v836_v22 = vpop.f32.mrb[21].mxu1  ;;  %v765_v23 = vpop.f32.mrb[22].mxu0  ;;  %1087 = vmatprep.subr.bf16.mxu0 %v896_v14 }
 0x248   : > { %v837_v24 = vadd.f32 %v836_v22, %v657_v8  ;;  %v766_v25 = vadd.f32 %v765_v23, %v662_v12  ;;  %v838_v26 = vpop.f32.mrb[22].mxu1  ;;  %1200 = vmatprep.subr.bf16.mxu1 %v898_v16  ;;  %v767_v27 = vpop.f32.mrb[23].mxu0  ;;  %1088 = vmatpush1.bf16.msra.mxu0 %v895_v10  ;;  %v871_v31 = vmax.f32 %v762_v17, 0.0 }
 0x249   : > { %v839_v28 = vadd.f32 %v838_v26, %v662_v12  ;;  %v768_v29 = vadd.f32 %v767_v27, %v662_v12  ;;  %v840_v30 = vpop.f32.mrb[23].mxu1  ;;  %1201 = vmatpush1.bf16.msra.mxu1 %v897_v13  ;;  %v873_v34 = vmax.f32 %v835_v20, 0.0  ;;  %v872_v35 = vmax.f32 %v764_v21, 0.0  ;;  %v682_v9 = vpop.permute.xlu1 %681 }
 0x24a   : > { %v875_v32 = vmax.f32 %v766_v25, 0.0  ;;  %v841_v33 = vadd.f32 %v840_v30, %v662_v12  ;;  %v874_v39 = vmax.f32 %v837_v24, 0.0 }
 0x24b   : > { %v877_v36 = vmax.f32 %v839_v28, 0.0  ;;  %v876_v37 = vmax.f32 %v768_v29, 0.0 }
 0x24c   : > { %v899_v40 = vpack.c.bf16 %v875_v32, %v871_v31  ;;  %v878_v41 = vmax.f32 %v841_v33, 0.0 }
 0x24d   : > { %v901_v43 = vpack.c.bf16 %v877_v36, %v873_v34  ;;  %v900_v44 = vpack.c.bf16 %v876_v37, %v872_v35  ;;  %v771_v45 = vpop.f32.mrb[24].mxu0 }
 0x24e   : > { %v902_v46 = vpack.c.bf16 %v878_v41, %v874_v39  ;;  %v772_v47 = vadd.f32 %v771_v45, %v667_v38  ;;  %v844_v48 = vpop.f32.mrb[24].mxu1  ;;  %v773_v49 = vpop.f32.mrb[25].mxu0  ;;  %v1668_v41 = vld [vmem:[%s2398_s5] sm:$0xff]  }
 0x24f   : > { %v845_v50 = vadd.f32 %v844_v48, %v667_v38  ;;  %v774_v51 = vadd.f32 %v773_v49, %v667_v38  ;;  %v846_v52 = vpop.f32.mrb[25].mxu1  ;;  %v775_v53 = vpop.f32.mrb[26].mxu0  ;;  %1089 = vmatprep.subr.bf16.mxu0 %v900_v44  ;;  %v1671_v44 = vld [vmem:[%s2398_s5 + $0x18] sm:$0xff]   ;;  %v1672_v45 = vld [vmem:[%s2398_s5 + $0x20] sm:$0xff]  }
 0x250   : > { %v847_v54 = vadd.f32 %v846_v52, %v667_v38  ;;  %v776_v55 = vadd.f32 %v775_v53, %v672_v42  ;;  %v848_v56 = vpop.f32.mrb[26].mxu1  ;;  %1202 = vmatprep.subr.bf16.mxu1 %v902_v46  ;;  %v777_v57 = vpop.f32.mrb[27].mxu0  ;;  %1090 = vmatpush1.bf16.msra.mxu0 %v899_v40  ;;  %v879_v61 = vmax.f32 %v772_v47, 0.0  ;;  %v1673_v46 = vld [vmem:[%s2398_s5 + $0x28] sm:$0xff]   ;;  %v1674_v47 = vld [vmem:[%s2398_s5 + $0x30] sm:$0xff]   ;;  %v1675_v48 = vld [vmem:[%s2398_s5 + $0x38] sm:$0xff]  }
 0x251   : > { %v849_v58 = vadd.f32 %v848_v56, %v672_v42  ;;  %v778_v59 = vadd.f32 %v777_v57, %v672_v42  ;;  %v850_v60 = vpop.f32.mrb[27].mxu1  ;;  %1203 = vmatpush1.bf16.msra.mxu1 %v901_v43  ;;  %v881_v1 = vmax.f32 %v845_v50, 0.0  ;;  %v880_v2 = vmax.f32 %v774_v51, 0.0  ;;  %v1670_v43 = vld [vmem:[%s2398_s5 + $0x10] sm:$0xff]   ;;  %v946_v49 = vpop.permute.xlu0 %945 }
 0x252   : > { %v883_v62 = vmax.f32 %v776_v55, 0.0  ;;  %v851_v63 = vadd.f32 %v850_v60, %v672_v42  ;;  %v882_v6 = vmax.f32 %v847_v54, 0.0  ;;  %v1669_v42 = vld [vmem:[%s2398_s5 + $0x8] sm:$0xff]   ;;  %v951_v50 = vpop.permute.xlu1 %950 }
 0x253   : > { %v885_v3 = vmax.f32 %v849_v58, 0.0  ;;  %v884_v4 = vmax.f32 %v778_v59, 0.0 }
 0x254   : > { %v903_v7 = vpack.c.bf16 %v883_v62, %v879_v61  ;;  %v886_v8 = vmax.f32 %v851_v63, 0.0 }
 0x255   : > { %v905_v10 = vpack.c.bf16 %v885_v3, %v881_v1  ;;  %v904_v11 = vpack.c.bf16 %v884_v4, %v880_v2  ;;  %v781_v12 = vpop.f32.mrb[28].mxu0  ;;  %v956_v3 = vpop.permute.xlu0 %955 }
 0x256   : > { %v906_v13 = vpack.c.bf16 %v886_v8, %v882_v6  ;;  %v782_v14 = vadd.f32 %v781_v12, %v677_v5  ;;  %v854_v15 = vpop.f32.mrb[28].mxu1  ;;  %v783_v16 = vpop.f32.mrb[29].mxu0 }
 0x257   : > { %v855_v17 = vadd.f32 %v854_v15, %v677_v5  ;;  %v784_v18 = vadd.f32 %v783_v16, %v677_v5  ;;  %v856_v19 = vpop.f32.mrb[29].mxu1  ;;  %v785_v20 = vpop.f32.mrb[30].mxu0  ;;  %1091 = vmatprep.subr.bf16.mxu0 %v904_v11 }
 0x258   : > { %v857_v21 = vadd.f32 %v856_v19, %v677_v5  ;;  %v786_v22 = vadd.f32 %v785_v20, %v682_v9  ;;  %v858_v23 = vpop.f32.mrb[30].mxu1  ;;  %1204 = vmatprep.subr.bf16.mxu1 %v906_v13  ;;  %v787_v24 = vpop.f32.mrb[31].mxu0  ;;  %1092 = vmatpush1.bf16.msra.mxu0 %v903_v7  ;;  %v887_v28 = vmax.f32 %v782_v14, 0.0 }
 0x259   : > { %v859_v25 = vadd.f32 %v858_v23, %v682_v9  ;;  %v788_v26 = vadd.f32 %v787_v24, %v682_v9  ;;  %v860_v27 = vpop.f32.mrb[31].mxu1  ;;  %1205 = vmatpush1.bf16.msra.mxu1 %v905_v10  ;;  %v889_v31 = vmax.f32 %v855_v17, 0.0  ;;  %v888_v32 = vmax.f32 %v784_v18, 0.0  ;;  %v961_v4 = vpop.permute.xlu1 %960 }
 0x25a   : > { %v891_v29 = vmax.f32 %v786_v22, 0.0  ;;  %v861_v30 = vadd.f32 %v860_v27, %v682_v9  ;;  %v890_v35 = vmax.f32 %v857_v21, 0.0  ;;  %v966_v21 = vpop.permute.xlu0 %965 }
 0x25b   : > { %v893_v33 = vmax.f32 %v859_v25, 0.0  ;;  %v892_v34 = vmax.f32 %v788_v26, 0.0 }
 0x25c   : > { %v907_v36 = vpack.c.bf16 %v891_v29, %v887_v28  ;;  %v894_v37 = vmax.f32 %v861_v30, 0.0 }
 0x25d   : > { %v909_v38 = vpack.c.bf16 %v893_v33, %v889_v31  ;;  %v908_v39 = vpack.c.bf16 %v892_v34, %v888_v32  ;;  %v971_v22 = vpop.permute.xlu1 %970 }
 0x25e   : > { %v910_v40 = vpack.c.bf16 %v894_v37, %v890_v35 }
 0x25f   : > { %1093 = vmatprep.subr.bf16.mxu0 %v908_v39  ;;  %v976_v39 = vpop.permute.xlu0 %975 }
 0x260   : > { %1206 = vmatprep.subr.bf16.mxu1 %v910_v40  ;;  %1094 = vmatpush1.bf16.msra.mxu0 %v907_v36 }
 0x261   : > { %1207 = vmatpush1.bf16.msra.mxu1 %v909_v38  ;;  %v981_v40 = vpop.permute.xlu1 %980 }
 0x263   : > { %1538 = vmatmul.mubr.msk.bf16.vlgmr.msra.gmra.mrb[32].mxu0 %vm704_vm1, %v1668_v41 }
 0x264   : > { %1546 = vmatmul.mubr.msk.bf16.vlgmr.msra.gmra.mrb[32].mxu1 %vm704_vm1, %v1668_v41  ;;  %1129 = vmatprep.mubr.bf16.mxu0 %v1845_v0 }
 0x265   : > { %1242 = vmatprep.mubr.bf16.mxu1 %v1845_v0 }
 0x26b   : > { %1539 = vmatmul.mubr.msk.bf16.gmra.mrb[36].mxu0 %vm704_vm1, %v1669_v42 }
 0x26c   : > { %1547 = vmatmul.mubr.msk.bf16.gmra.mrb[36].mxu1 %vm704_vm1, %v1669_v42  ;;  %1139 = vmatprep.mubr.bf16.mxu0 %v1845_v0 }
 0x26d   : > { %1252 = vmatprep.mubr.bf16.mxu1 %v1845_v0 }
 0x273   : > { %1540 = vmatmul.mubr.msk.bf16.gmra.mrb[40].mxu0 %vm704_vm1, %v1670_v43 }
 0x274   : > { %1548 = vmatmul.mubr.msk.bf16.gmra.mrb[40].mxu1 %vm704_vm1, %v1670_v43  ;;  %1149 = vmatprep.mubr.bf16.mxu0 %v1845_v0 }
 0x275   : > { %1262 = vmatprep.mubr.bf16.mxu1 %v1845_v0 }
 0x27b   : > { %1541 = vmatmul.mubr.msk.bf16.gmra.mrb[44].mxu0 %vm704_vm1, %v1671_v44 }
 0x27c   : > { %1549 = vmatmul.mubr.msk.bf16.gmra.mrb[44].mxu1 %vm704_vm1, %v1671_v44  ;;  %1159 = vmatprep.mubr.bf16.mxu0 %v1845_v0 }
 0x27d   : > { %1272 = vmatprep.mubr.bf16.mxu1 %v1845_v0 }
 0x283   : > { %1542 = vmatmul.mubr.msk.bf16.gmra.mrb[48].mxu0 %vm704_vm1, %v1672_v45 }
 0x284   : > { %1550 = vmatmul.mubr.msk.bf16.gmra.mrb[48].mxu1 %vm704_vm1, %v1672_v45  ;;  %1169 = vmatprep.mubr.bf16.mxu0 %v1845_v0 }
 0x285   : > { %1282 = vmatprep.mubr.bf16.mxu1 %v1845_v0 }
 0x28b   : > { %1543 = vmatmul.mubr.msk.bf16.gmra.mrb[52].mxu0 %vm704_vm1, %v1673_v46 }
 0x28c   : > { %1551 = vmatmul.mubr.msk.bf16.gmra.mrb[52].mxu1 %vm704_vm1, %v1673_v46  ;;  %1179 = vmatprep.mubr.bf16.mxu0 %v1845_v0 }
 0x28d   : > { %1292 = vmatprep.mubr.bf16.mxu1 %v1845_v0 }
 0x293   : > { %1544 = vmatmul.mubr.msk.bf16.gmra.mrb[56].mxu0 %vm704_vm1, %v1674_v47 }
 0x294   : > { %1552 = vmatmul.mubr.msk.bf16.gmra.mrb[56].mxu1 %vm704_vm1, %v1674_v47  ;;  %1189 = vmatprep.mubr.bf16.mxu0 %v1845_v0 }
 0x295   : > { %1302 = vmatprep.mubr.bf16.mxu1 %v1845_v0 }
 0x29b   : > { %1545 = vmatmul.mubr.msk.bf16.gmra.mrb[60].mxu0 %vm704_vm1, %v1675_v48 }
 0x29c   : > { %1553 = vmatmul.mubr.msk.bf16.gmra.mrb[60].mxu1 %vm704_vm1, %v1675_v48 }
 0x336   : > { %v1121_v51 = vpop.f32.mrb[32].mxu0 }
 0x337   : > { %v1122_v52 = vadd.f32 %v1121_v51, %v946_v49  ;;  %v1234_v53 = vpop.f32.mrb[32].mxu1  ;;  %v1123_v54 = vpop.f32.mrb[33].mxu0 }
 0x338   : > { %v1235_v55 = vadd.f32 %v1234_v53, %v946_v49  ;;  %v1124_v56 = vadd.f32 %v1123_v54, %v946_v49  ;;  %v1236_v57 = vpop.f32.mrb[33].mxu1  ;;  %v1125_v58 = vpop.f32.mrb[34].mxu0 }
 0x339   : > { %1313 = vst [vmem:[%s2265_s3] sm:$0xff] %v1122_v52  ;;  %v1237_v0 = vadd.f32 %v1236_v57, %v946_v49  ;;  %v1126_v59 = vadd.f32 %v1125_v58, %v951_v50  ;;  %v1238_v60 = vpop.f32.mrb[34].mxu1  ;;  %v1127_v61 = vpop.f32.mrb[35].mxu0 }
 0x33a   : > { %1315 = vst [vmem:[%s2265_s3 + $0x10] sm:$0xff] %v1235_v55  ;;  %1314 = vst [vmem:[%s2265_s3 + $0x8] sm:$0xff] %v1124_v56  ;;  %v1239_v62 = vadd.f32 %v1238_v60, %v951_v50  ;;  %v1128_v63 = vadd.f32 %v1127_v61, %v951_v50  ;;  %v1240_v1 = vpop.f32.mrb[35].mxu1  ;;  %v986_v57 = vpop.permute.xlu0 %985 }
 0x33b   : > { %1316 = vst [vmem:[%s2265_s3 + $0x18] sm:$0xff] %v1237_v0  ;;  %1317 = vst [vmem:[%s2265_s3 + $0x20] sm:$0xff] %v1126_v59  ;;  %v1241_v2 = vadd.f32 %v1240_v1, %v951_v50  ;;  %v991_v58 = vpop.permute.xlu1 %990 }
 0x33c   : > { %1319 = vst [vmem:[%s2265_s3 + $0x30] sm:$0xff] %v1239_v62  ;;  %1318 = vst [vmem:[%s2265_s3 + $0x28] sm:$0xff] %v1128_v63 }
 0x33d   : > { %1320 = vst [vmem:[%s2265_s3 + $0x38] sm:$0xff] %v1241_v2 }
 0x33e   : > { %v1131_v5 = vpop.f32.mrb[36].mxu0 }
 0x33f   : > { %v1132_v6 = vadd.f32 %v1131_v5, %v956_v3  ;;  %v1244_v7 = vpop.f32.mrb[36].mxu1  ;;  %v1133_v8 = vpop.f32.mrb[37].mxu0 }
 0x340   : > { %v1245_v9 = vadd.f32 %v1244_v7, %v956_v3  ;;  %v1134_v10 = vadd.f32 %v1133_v8, %v956_v3  ;;  %v1246_v11 = vpop.f32.mrb[37].mxu1  ;;  %v1135_v12 = vpop.f32.mrb[38].mxu0 }
 0x341   : > { %1321 = vst [vmem:[%s2265_s3 + $0x40] sm:$0xff] %v1132_v6  ;;  %v1247_v13 = vadd.f32 %v1246_v11, %v956_v3  ;;  %v1136_v14 = vadd.f32 %v1135_v12, %v961_v4  ;;  %v1248_v15 = vpop.f32.mrb[38].mxu1  ;;  %v1137_v16 = vpop.f32.mrb[39].mxu0 }
 0x342   : > { %1323 = vst [vmem:[%s2265_s3 + $0x50] sm:$0xff] %v1245_v9  ;;  %1322 = vst [vmem:[%s2265_s3 + $0x48] sm:$0xff] %v1134_v10  ;;  %v1249_v17 = vadd.f32 %v1248_v15, %v961_v4  ;;  %v1138_v18 = vadd.f32 %v1137_v16, %v961_v4  ;;  %v1250_v19 = vpop.f32.mrb[39].mxu1  ;;  %v996_v11 = vpop.permute.xlu0 %995 }
 0x343   : > { %1324 = vst [vmem:[%s2265_s3 + $0x58] sm:$0xff] %v1247_v13  ;;  %1325 = vst [vmem:[%s2265_s3 + $0x60] sm:$0xff] %v1136_v14  ;;  %v1251_v20 = vadd.f32 %v1250_v19, %v961_v4  ;;  %v1001_v12 = vpop.permute.xlu1 %1000 }
 0x344   : > { %1327 = vst [vmem:[%s2265_s3 + $0x70] sm:$0xff] %v1249_v17  ;;  %1326 = vst [vmem:[%s2265_s3 + $0x68] sm:$0xff] %v1138_v18 }
 0x345   : > { %1328 = vst [vmem:[%s2265_s3 + $0x78] sm:$0xff] %v1251_v20 }
 0x346   : > { %v1141_v23 = vpop.f32.mrb[40].mxu0 }
 0x347   : > { %v1142_v24 = vadd.f32 %v1141_v23, %v966_v21  ;;  %v1254_v25 = vpop.f32.mrb[40].mxu1  ;;  %v1143_v26 = vpop.f32.mrb[41].mxu0 }
 0x348   : > { %v1255_v27 = vadd.f32 %v1254_v25, %v966_v21  ;;  %v1144_v28 = vadd.f32 %v1143_v26, %v966_v21  ;;  %v1256_v29 = vpop.f32.mrb[41].mxu1  ;;  %v1145_v30 = vpop.f32.mrb[42].mxu0 }
 0x349   : > { %1329 = vst [vmem:[%s2265_s3 + $0x80] sm:$0xff] %v1142_v24  ;;  %v1257_v31 = vadd.f32 %v1256_v29, %v966_v21  ;;  %v1146_v32 = vadd.f32 %v1145_v30, %v971_v22  ;;  %v1258_v33 = vpop.f32.mrb[42].mxu1  ;;  %v1147_v34 = vpop.f32.mrb[43].mxu0 }
 0x34a   : > { %1331 = vst [vmem:[%s2265_s3 + $0x90] sm:$0xff] %v1255_v27  ;;  %1330 = vst [vmem:[%s2265_s3 + $0x88] sm:$0xff] %v1144_v28  ;;  %v1259_v35 = vadd.f32 %v1258_v33, %v971_v22  ;;  %v1148_v36 = vadd.f32 %v1147_v34, %v971_v22  ;;  %v1260_v37 = vpop.f32.mrb[43].mxu1  ;;  %v1006_v29 = vpop.permute.xlu0 %1005 }
 0x34b   : > { %1332 = vst [vmem:[%s2265_s3 + $0x98] sm:$0xff] %v1257_v31  ;;  %1333 = vst [vmem:[%s2265_s3 + $0xa0] sm:$0xff] %v1146_v32  ;;  %v1261_v38 = vadd.f32 %v1260_v37, %v971_v22  ;;  %v1011_v30 = vpop.permute.xlu1 %1010 }
 0x34c   : > { %1335 = vst [vmem:[%s2265_s3 + $0xb0] sm:$0xff] %v1259_v35  ;;  %1334 = vst [vmem:[%s2265_s3 + $0xa8] sm:$0xff] %v1148_v36 }
 0x34d   : > { %1336 = vst [vmem:[%s2265_s3 + $0xb8] sm:$0xff] %v1261_v38 }
 0x34e   : > { %v1151_v41 = vpop.f32.mrb[44].mxu0 }
 0x34f   : > { %v1152_v42 = vadd.f32 %v1151_v41, %v976_v39  ;;  %v1264_v43 = vpop.f32.mrb[44].mxu1  ;;  %v1153_v44 = vpop.f32.mrb[45].mxu0 }
 0x350   : > { %v1265_v45 = vadd.f32 %v1264_v43, %v976_v39  ;;  %v1154_v46 = vadd.f32 %v1153_v44, %v976_v39  ;;  %v1266_v47 = vpop.f32.mrb[45].mxu1  ;;  %v1155_v48 = vpop.f32.mrb[46].mxu0 }
 0x351   : > { %1337 = vst [vmem:[%s2265_s3 + $0xc0] sm:$0xff] %v1152_v42  ;;  %v1267_v49 = vadd.f32 %v1266_v47, %v976_v39  ;;  %v1156_v50 = vadd.f32 %v1155_v48, %v981_v40  ;;  %v1268_v51 = vpop.f32.mrb[46].mxu1  ;;  %v1157_v52 = vpop.f32.mrb[47].mxu0 }
 0x352   : > { %1339 = vst [vmem:[%s2265_s3 + $0xd0] sm:$0xff] %v1265_v45  ;;  %1338 = vst [vmem:[%s2265_s3 + $0xc8] sm:$0xff] %v1154_v46  ;;  %v1269_v53 = vadd.f32 %v1268_v51, %v981_v40  ;;  %v1158_v54 = vadd.f32 %v1157_v52, %v981_v40  ;;  %v1270_v55 = vpop.f32.mrb[47].mxu1  ;;  %v1016_v47 = vpop.permute.xlu0 %1015 }
 0x353   : > { %1340 = vst [vmem:[%s2265_s3 + $0xd8] sm:$0xff] %v1267_v49  ;;  %1341 = vst [vmem:[%s2265_s3 + $0xe0] sm:$0xff] %v1156_v50  ;;  %v1271_v56 = vadd.f32 %v1270_v55, %v981_v40  ;;  %v1021_v48 = vpop.permute.xlu1 %1020 }
 0x354   : > { %1343 = vst [vmem:[%s2265_s3 + $0xf0] sm:$0xff] %v1269_v53  ;;  %1342 = vst [vmem:[%s2265_s3 + $0xe8] sm:$0xff] %v1158_v54 }
 0x355   : > { %1344 = vst [vmem:[%s2265_s3 + $0xf8] sm:$0xff] %v1271_v56 }
 0x356   : > { %v1161_v0 = vpop.f32.mrb[48].mxu0 }
 0x357   : > { %v1162_v59 = vadd.f32 %v1161_v0, %v986_v57  ;;  %v1274_v60 = vpop.f32.mrb[48].mxu1  ;;  %v1163_v61 = vpop.f32.mrb[49].mxu0 }
 0x358   : > { %v1275_v62 = vadd.f32 %v1274_v60, %v986_v57  ;;  %v1164_v63 = vadd.f32 %v1163_v61, %v986_v57  ;;  %v1276_v1 = vpop.f32.mrb[49].mxu1  ;;  %v1165_v2 = vpop.f32.mrb[50].mxu0 }
 0x359   : > { %1345 = vst [vmem:[%s2265_s3 + $0x100] sm:$0xff] %v1162_v59  ;;  %v1277_v3 = vadd.f32 %v1276_v1, %v986_v57  ;;  %v1166_v4 = vadd.f32 %v1165_v2, %v991_v58  ;;  %v1278_v5 = vpop.f32.mrb[50].mxu1  ;;  %v1167_v6 = vpop.f32.mrb[51].mxu0 }
 0x35a   : > { %1347 = vst [vmem:[%s2265_s3 + $0x110] sm:$0xff] %v1275_v62  ;;  %1346 = vst [vmem:[%s2265_s3 + $0x108] sm:$0xff] %v1164_v63  ;;  %v1279_v7 = vadd.f32 %v1278_v5, %v991_v58  ;;  %v1168_v8 = vadd.f32 %v1167_v6, %v991_v58  ;;  %v1280_v9 = vpop.f32.mrb[51].mxu1 }
 0x35b   : > { %1348 = vst [vmem:[%s2265_s3 + $0x118] sm:$0xff] %v1277_v3  ;;  %1349 = vst [vmem:[%s2265_s3 + $0x120] sm:$0xff] %v1166_v4  ;;  %v1281_v10 = vadd.f32 %v1280_v9, %v991_v58 }
 0x35c   : > { %1351 = vst [vmem:[%s2265_s3 + $0x130] sm:$0xff] %v1279_v7  ;;  %1350 = vst [vmem:[%s2265_s3 + $0x128] sm:$0xff] %v1168_v8 }
 0x35d   : > { %1352 = vst [vmem:[%s2265_s3 + $0x138] sm:$0xff] %v1281_v10 }
 0x35e   : > { %v1171_v13 = vpop.f32.mrb[52].mxu0 }
 0x35f   : > { %v1172_v14 = vadd.f32 %v1171_v13, %v996_v11  ;;  %v1284_v15 = vpop.f32.mrb[52].mxu1  ;;  %v1173_v16 = vpop.f32.mrb[53].mxu0 }
 0x360   : > { %v1285_v17 = vadd.f32 %v1284_v15, %v996_v11  ;;  %v1174_v18 = vadd.f32 %v1173_v16, %v996_v11  ;;  %v1286_v19 = vpop.f32.mrb[53].mxu1  ;;  %v1175_v20 = vpop.f32.mrb[54].mxu0 }
 0x361   : > { %1353 = vst [vmem:[%s2265_s3 + $0x140] sm:$0xff] %v1172_v14  ;;  %v1287_v21 = vadd.f32 %v1286_v19, %v996_v11  ;;  %v1176_v22 = vadd.f32 %v1175_v20, %v1001_v12  ;;  %v1288_v23 = vpop.f32.mrb[54].mxu1  ;;  %v1177_v24 = vpop.f32.mrb[55].mxu0 }
 0x362   : > { %1355 = vst [vmem:[%s2265_s3 + $0x150] sm:$0xff] %v1285_v17  ;;  %1354 = vst [vmem:[%s2265_s3 + $0x148] sm:$0xff] %v1174_v18  ;;  %v1289_v25 = vadd.f32 %v1288_v23, %v1001_v12  ;;  %v1178_v26 = vadd.f32 %v1177_v24, %v1001_v12  ;;  %v1290_v27 = vpop.f32.mrb[55].mxu1 }
 0x363   : > { %1356 = vst [vmem:[%s2265_s3 + $0x158] sm:$0xff] %v1287_v21  ;;  %1357 = vst [vmem:[%s2265_s3 + $0x160] sm:$0xff] %v1176_v22  ;;  %v1291_v28 = vadd.f32 %v1290_v27, %v1001_v12 }
 0x364   : > { %1359 = vst [vmem:[%s2265_s3 + $0x170] sm:$0xff] %v1289_v25  ;;  %1358 = vst [vmem:[%s2265_s3 + $0x168] sm:$0xff] %v1178_v26 }
 0x365   : > { %1360 = vst [vmem:[%s2265_s3 + $0x178] sm:$0xff] %v1291_v28 }
 0x366   : > { %v1181_v31 = vpop.f32.mrb[56].mxu0 }
 0x367   : > { %v1182_v32 = vadd.f32 %v1181_v31, %v1006_v29  ;;  %v1294_v33 = vpop.f32.mrb[56].mxu1  ;;  %v1183_v34 = vpop.f32.mrb[57].mxu0 }
 0x368   : > { %v1295_v35 = vadd.f32 %v1294_v33, %v1006_v29  ;;  %v1184_v36 = vadd.f32 %v1183_v34, %v1006_v29  ;;  %v1296_v37 = vpop.f32.mrb[57].mxu1  ;;  %v1185_v38 = vpop.f32.mrb[58].mxu0 }
 0x369   : > { %1361 = vst [vmem:[%s2265_s3 + $0x180] sm:$0xff] %v1182_v32  ;;  %v1297_v39 = vadd.f32 %v1296_v37, %v1006_v29  ;;  %v1186_v40 = vadd.f32 %v1185_v38, %v1011_v30  ;;  %v1298_v41 = vpop.f32.mrb[58].mxu1  ;;  %v1187_v42 = vpop.f32.mrb[59].mxu0 }
 0x36a   : > { %1363 = vst [vmem:[%s2265_s3 + $0x190] sm:$0xff] %v1295_v35  ;;  %1362 = vst [vmem:[%s2265_s3 + $0x188] sm:$0xff] %v1184_v36  ;;  %v1299_v43 = vadd.f32 %v1298_v41, %v1011_v30  ;;  %v1188_v44 = vadd.f32 %v1187_v42, %v1011_v30  ;;  %v1300_v45 = vpop.f32.mrb[59].mxu1 }
 0x36b   : > { %1364 = vst [vmem:[%s2265_s3 + $0x198] sm:$0xff] %v1297_v39  ;;  %1365 = vst [vmem:[%s2265_s3 + $0x1a0] sm:$0xff] %v1186_v40  ;;  %v1301_v46 = vadd.f32 %v1300_v45, %v1011_v30 }
 0x36c   : > { %1367 = vst [vmem:[%s2265_s3 + $0x1b0] sm:$0xff] %v1299_v43  ;;  %1366 = vst [vmem:[%s2265_s3 + $0x1a8] sm:$0xff] %v1188_v44 }
 0x36d   : > { %1368 = vst [vmem:[%s2265_s3 + $0x1b8] sm:$0xff] %v1301_v46 }
 0x36e   : > { %v1191_v49 = vpop.f32.mrb[60].mxu0 }
 0x36f   : > { %v1192_v50 = vadd.f32 %v1191_v49, %v1016_v47  ;;  %v1304_v51 = vpop.f32.mrb[60].mxu1  ;;  %v1193_v52 = vpop.f32.mrb[61].mxu0 }
 0x370   : > { %v1305_v53 = vadd.f32 %v1304_v51, %v1016_v47  ;;  %v1194_v54 = vadd.f32 %v1193_v52, %v1016_v47  ;;  %v1306_v55 = vpop.f32.mrb[61].mxu1  ;;  %v1195_v56 = vpop.f32.mrb[62].mxu0 }
 0x371   : > { %1369 = vst [vmem:[%s2265_s3 + $0x1c0] sm:$0xff] %v1192_v50  ;;  %v1307_v57 = vadd.f32 %v1306_v55, %v1016_v47  ;;  %v1196_v58 = vadd.f32 %v1195_v56, %v1021_v48  ;;  %v1308_v0 = vpop.f32.mrb[62].mxu1  ;;  %v1197_v59 = vpop.f32.mrb[63].mxu0 }
 0x372   : > { %1371 = vst [vmem:[%s2265_s3 + $0x1d0] sm:$0xff] %v1305_v53  ;;  %1370 = vst [vmem:[%s2265_s3 + $0x1c8] sm:$0xff] %v1194_v54  ;;  %v1309_v60 = vadd.f32 %v1308_v0, %v1021_v48  ;;  %v1198_v61 = vadd.f32 %v1197_v59, %v1021_v48  ;;  %v1310_v62 = vpop.f32.mrb[63].mxu1 }
 0x373   : > { %1372 = vst [vmem:[%s2265_s3 + $0x1d8] sm:$0xff] %v1307_v57  ;;  %1373 = vst [vmem:[%s2265_s3 + $0x1e0] sm:$0xff] %v1196_v58  ;;  %v1311_v63 = vadd.f32 %v1310_v62, %v1021_v48 }
 0x374   : > { %1375 = vst [vmem:[%s2265_s3 + $0x1f0] sm:$0xff] %v1309_v60  ;;  %1374 = vst [vmem:[%s2265_s3 + $0x1e8] sm:$0xff] %v1198_v61 }
 0x375   : > { %1376 = vst [vmem:[%s2265_s3 + $0x1f8] sm:$0xff] %v1311_v63 }
 0x376   : > { %1747 = shalt.err (!%p1744_p9)
}
 0x377   : > { %s1748_s24 = scalar_lea.hbm %s2330_s9, 8192  ;;  %s1752_s28 = scalar_lea.hbm %s2440_s20, 65536 }
 0x378   : > { %p1749_p2 = scmp.ne.s32.totalorder %s2330_s9, %s1748_s24  ;;  %p1753_p1 = scmp.lt.u32.totalorder %s2330_s9, %s2440_s20 }
 0x379   : > { %p1754_p4 = scmp.lt.u32.totalorder %s1752_s28, %s1748_s24  ;;  %p1756_p12 = scmp.lt.u32.totalorder %s1748_s24, %s2330_s9 }
 0x37a   : > { %p1750_p6 = pnand %p1749_p2, %p2442_p13 }
 0x37b   : > { %p1755_p11 = por %p1754_p4, %p1753_p1 }
 0x37c   : > { %p1751_p10 = pneg %p1750_p6 }
 0x37d   : > { %p1757_p5 = por %p1756_p12, %p1755_p11 }
 0x37f   : > { %p1758_p0 = pnand %p1757_p5, %p1751_p10 }
 0x381   : > { %1761 = shalt.err (!%p1758_p0)
}
 0x382   : > { %s1847_s17 = smov 512   ;;  %s1848_s27 = smov 2048  }
 0x383   : > { %s1849_s11 = smov 32  }
 0x384   : > { %1566 = dma.vmem_to_hbm [thread:$0]  (%p2442_p13), %s2334_s21, 8192, %s2330_s9, %s1378_s19, %s1847_s17, %s1848_s27, %s1849_s11  }
 0x385 PF: > { %s2443_s8 = sld [smem:[#allocation14_spill]]  ;;  %s2444_s22 = sld [smem:[#allocation11_spill]] }
 0x386   : > { %s2445_s16 = sld [smem:[#allocation16_spill]] }
 0x38b   : > { %p1583_p3 = scmp.ge.s32.totalorder %s2443_s8, 2  ;;  %s1408_s23 = sand.u32 1, %s2444_s22  }
 0x38c   : > { %p2446_p7 = scmp.ne.s32.totalorder %s2445_s16, 0  ;;  %s1409_s13 = scalar_lea.sflag [#allocation4], %s1408_s23 }
 0x38e   : > { %p1577_p8 = pnand %p1583_p3, %p2446_p7 }
 0x390   : > { %1803 = dma.done.wait (!%p1577_p8), %s1409_s13, 8192  }
 0x391   : > { %1805 = vsyncadd (!%p1577_p8), %s1409_s13, 4294959104  ;;  %s24_s8 = sadd.s32 1, %s2443_s8   ;;  %s2447_s27 = sld [smem:[#allocation13_spill]] }
 0x392   : > { %p21_p9 = scmp.ge.s32.totalorder %s24_s8, 10   ;;  %s2448_s7 = sld [smem:[#allocation17_spill]] }
 0x393   : > { %s2449_s24 = smov %s1812_s25  ;;  %s2450_s25 = smov %s1816_s26 }
 0x394   : > { %s2451_s26 = smov %s2021_s29  ;;  %s2452_s28 = smov %s1832_s30 }
 0x395   : > { %s2454_s30 = smov %s2460_s10  ;;  %23 = sbr.rel (!%p21_p9) target bundleno = 11 (0xb), region = 97 }
 0x398   : > { %s2453_s29 = smov %s2448_s7 }
 0x39c   :  { %1414 = vsyncpa [#allocation3], 1 }
 0x39d   :  { %1416 = vsyncpa [#allocation3 + $0x1], 1 }
 0x39e   :  { %1417 = vsyncpa [#allocation6], 1 }
 0x39f   :  { %1418 = vsyncpa [#allocation4], 1 }
 0x3a0   :  { %1420 = vsyncpa [#allocation4 + $0x1], 1 }

</bundles_post_ra>
